<compile_context>
chip_gen: v7x
topology: tpu7x:2x2x1
jax: 0.10.0
libtpu: 0.0.40
codegen_flags: <defaults>
</compile_context>

<pallas_src>
import functools

import jax
import jax.numpy as jnp
from jax.experimental import pallas as pl
from jax.experimental.pallas import tpu as pltpu

ALPHA = 1.0
GAMMA = 2.0

_LANE = 128
_SUBLANE = 8
_SMALL_C_MAX = 64                 # <= this -> transposed (lanes = samples) layout
_TARGET_TILE_ELEMS = 1 << 20      # ~4 MiB of f32 compute working set per tile


def _round_up(x, m):
    return (x + m - 1) // m * m


def _vmem_budgets():
    """Chip-aware (input_budget_bytes, vmem_limit_bytes)."""
    cap = 64 * 1024 * 1024                       # conservative default (v7x per-TC)
    try:
        info = pltpu.get_tpu_info()
        cap = int(getattr(info, "vmem_capacity_bytes", cap) or cap)
    except Exception:
        pass
    if cap >= 96 * 1024 * 1024:                  # v5e / v6e: 128 MiB VMEM
        return 48 * 1024 * 1024, 80 * 1024 * 1024
    return 24 * 1024 * 1024, 40 * 1024 * 1024    # v7x: 64 MiB per TensorCore


def _pick_tile(n, c_pad, itemsize, gran, input_budget):
    """Samples per tile: big enough to amortize grid-step overhead, small
    enough for double-buffered inputs + f32 temporaries, >= 2 tiles if N allows."""
    t = max(_TARGET_TILE_ELEMS // max(c_pad, 1), 1)
    t = min(t, max((input_budget // 2) // (c_pad * itemsize), 1))
    t = max(t // gran * gran, gran)              # sublane / lane granularity
    t = min(t, _round_up(n, gran))               # never (much) bigger than N
    if n > gran:                                 # keep >= 2 grid steps (v7x megacore)
        t = min(t, _round_up(-(-n // 2), gran))
    return t


def _focal_weight(one_minus_p, gamma):
    """(1 - p) ** gamma, with integer gamma unrolled to plain VPU multiplies."""
    g = float(gamma)
    if g == int(g) and g >= 0:
        k = int(g)
        if k == 0:
            return jnp.ones_like(one_minus_p)
        w = None
        base = one_minus_p
        while k:
            if k & 1:
                w = base if w is None else w * base
            k >>= 1
            if k:
                base = base * base
        return w
    return jnp.power(one_minus_p, g)             # non-integer gamma fallback


def _focal_loss_kernel(x_ref, t_ref, out_ref, *, class_axis, n_valid,
                       tile_samples, alpha, gamma, mask_tail):
    sample_axis = 1 - class_axis
    x = x_ref[...].astype(jnp.float32)           # (tile, C) or (C, tile) logits
    t = t_ref[...]                               # (tile, 1) or (1, tile) int32

    # numerically stable log-softmax over the class axis
    m = jnp.max(x, axis=class_axis, keepdims=True)
    z = x - m
    lse = jnp.log(jnp.sum(jnp.exp(z), axis=class_axis, keepdims=True))

    # target-class logit via a one-hot *select* (no dynamic gather on TPU;
    # select, not multiply, so garbage lanes/rows cannot produce NaN)
    cls_idx = jax.lax.broadcasted_iota(jnp.int32, x.shape, class_axis)
    z_tgt = jnp.sum(jnp.where(cls_idx == t, z, 0.0),
                    axis=class_axis, keepdims=True)

    loss = lse - z_tgt                           # per-sample CE (reduce=False)
    p = jnp.exp(-loss)                           # EUP slot; replaces ez_tgt path
    fl = _focal_weight(jnp.maximum(1.0 - p, 0.0), gamma) * loss
    if float(alpha) != 1.0:
        fl = fl * alpha

    if mask_tail:                                # ragged last tile: zero OOB samples
        idx = (pl.program_id(0) * tile_samples
               + jax.lax.broadcasted_iota(jnp.int32, fl.shape, sample_axis))
        fl = jnp.where(idx < n_valid, fl, 0.0)

    # lane-dense partial-sum slab; wrapper reduces across tiles / divides by N
    out_ref[...] = jnp.full(out_ref.shape, jnp.sum(fl), dtype=jnp.float32)


def focal_loss(inputs, targets, *, alpha=ALPHA, gamma=GAMMA):
    """inputs: (N, C) float32/bfloat16 logits; targets: (N,) int class indices."""
    n, c = inputs.shape
    itemsize = jnp.dtype(inputs.dtype).itemsize
    input_budget, vmem_limit = _vmem_budgets()

    transposed = c <= _SMALL_C_MAX               # samples on the 128-lane axis

    if transposed:
        gran = _LANE
        c_pad = _round_up(c, _SUBLANE)           # physical sublane padding in VMEM
        x = inputs.T                             # one tiny extra pass; buys 8-12x
                                                 # lane utilisation for small C
        t2d = targets.astype(jnp.int32).reshape(1, n)
    else:
        gran = _SUBLANE
        c_pad = _round_up(c, _LANE)              # physical lane padding in VMEM
        x = inputs                               # streamed as-is (no pad copy)
        t2d = targets.astype(jnp.int32).reshape(n, 1)

    tile = _pick_tile(n, c_pad, itemsize, gran, input_budget)
    num_tiles = pl.cdiv(n, tile)
    mask_tail = (num_tiles * tile) != n

    if transposed:
        x_spec = pl.BlockSpec((c, tile), lambda i: (0, i))
        t_spec = pl.BlockSpec((1, tile), lambda i: (0, i))
    else:
        x_spec = pl.BlockSpec((tile, c), lambda i: (i, 0))
        t_spec = pl.BlockSpec((tile, 1), lambda i: (i, 0))

    kernel = functools.partial(
        _focal_loss_kernel,
        class_axis=0 if transposed else 1,
        n_valid=n, tile_samples=tile,
        alpha=alpha, gamma=gamma, mask_tail=mask_tail)

    partials = pl.pallas_call(
        kernel,
        out_shape=jax.ShapeDtypeStruct((num_tiles, _SUBLANE, _LANE), jnp.float32),
        grid_spec=pltpu.PrefetchScalarGridSpec(
            num_scalar_prefetch=0,
            grid=(num_tiles,),
            in_specs=[x_spec, t_spec],
            out_specs=pl.BlockSpec((1, _SUBLANE, _LANE), lambda i: (i, 0, 0)),
        ),
        compiler_params=pltpu.CompilerParams(
            dimension_semantics=("parallel",),
            vmem_limit_bytes=vmem_limit,
        ),
        cost_estimate=pl.CostEstimate(
            flops=8 * num_tiles * tile * c_pad,
            transcendentals=num_tiles * tile * (c_pad + 1),
            bytes_accessed=(num_tiles * tile * c_pad * itemsize + n * 4
                            + num_tiles * _SUBLANE * _LANE * 4),
        ),
    )(x, t2d)

    return jnp.sum(partials[:, 0, 0]) / jnp.float32(n)


def focal_loss_ref(inputs, targets, *, alpha=ALPHA, gamma=GAMMA):
    logp = jax.nn.log_softmax(inputs.astype(jnp.float32), axis=-1)
    loss = -jnp.take_along_axis(
        logp, targets[:, None].astype(jnp.int32), axis=-1)[:, 0]
    p = jnp.exp(-loss)
    return jnp.mean(alpha * (1.0 - p) ** gamma * loss)


if __name__ == "__main__":
    key = jax.random.PRNGKey(0)
    k1, k2, k3, k4, k5, k6, k7, k8 = jax.random.split(key, 8)

    cases = []

    # small-C classification (the module's typical use): transposed path
    N, C = 8, 16
    cases.append((jax.random.normal(k1, (N, C), dtype=jnp.float32),
                  jax.random.randint(k2, (N,), 0, C, dtype=jnp.int32), 1e-5))

    # awkward C + ragged N: exercises sub-tile masking on the single tile
    N, C = 37, 10
    cases.append((jax.random.normal(k3, (N, C), dtype=jnp.float32),
                  jax.random.randint(k4, (N,), 0, C, dtype=jnp.int32), 1e-5))

    # multi-tile transposed path + bf16 logits (kernel accumulates in f32)
    N, C = 300, 20
    cases.append((jax.random.normal(k5, (N, C), dtype=jnp.float32).astype(jnp.bfloat16),
                  jax.random.randint(k6, (N,), 0, C, dtype=jnp.int32), 1e-3))

    # larger class count: row-major streaming path, 2 grid steps
    N, C = 64, 200
    cases.append((jax.random.normal(k7, (N, C), dtype=jnp.float32),
                  jax.random.randint(k8, (N,), 0, C, dtype=jnp.int32), 1e-5))

    for inputs, targets, tol in cases:
        out = jax.block_until_ready(focal_loss(inputs, targets))
        ref = focal_loss_ref(inputs, targets)
        assert jnp.allclose(out, ref, atol=tol, rtol=tol), (inputs.shape, out, ref)

    print("KERNEL_OK")
</pallas_src>

<mosaic_0001>
module attributes {stable_mosaic.version = 11 : i64} {
  func.func @_focal_loss_kernel(%arg0: i32, %arg1: memref<16x128xf32, #tpu.memory_space<vmem>>, %arg2: memref<1x128xi32, #tpu.memory_space<vmem>>, %arg3: memref<1x8x128xf32, #tpu.memory_space<vmem>>) attributes {dimension_semantics = [#tpu.dimension_semantics<parallel>], iteration_bounds = array<i64: 1>, scalar_prefetch = 0 : i64, scratch_operands = 0 : i64, tpu.core_type = #tpu.core_type<tc>, window_params = [{transform_indices = @transform_0, window_bounds = array<i64: 16, 128>}, {transform_indices = @transform_1, window_bounds = array<i64: 1, 128>}, {transform_indices = @transform_2, window_bounds = array<i64: 1, 8, 128>}]} {
    %c0 = arith.constant 0 : index
    %c0_0 = arith.constant 0 : index
    %0 = vector.load %arg1[%c0, %c0_0] : memref<16x128xf32, #tpu.memory_space<vmem>>, vector<16x128xf32>
    %c0_1 = arith.constant 0 : index
    %c0_2 = arith.constant 0 : index
    %1 = vector.load %arg2[%c0_1, %c0_2] : memref<1x128xi32, #tpu.memory_space<vmem>>, vector<1x128xi32>
    %cst = arith.constant dense<0xFF800000> : vector<128xf32>
    %2 = vector.multi_reduction <maximumf>, %0, %cst [0] : vector<16x128xf32> to vector<128xf32>
    %3 = vector.shape_cast %2 : vector<128xf32> to vector<1x128xf32>
    %4 = vector.broadcast %3 : vector<1x128xf32> to vector<16x128xf32>
    %5 = arith.subf %0, %4 : vector<16x128xf32>
    %6 = math.exp %5 : vector<16x128xf32>
    %cst_3 = arith.constant dense<0.000000e+00> : vector<128xf32>
    %7 = vector.multi_reduction <add>, %6, %cst_3 [0] : vector<16x128xf32> to vector<128xf32>
    %8 = vector.shape_cast %7 : vector<128xf32> to vector<1x128xf32>
    %9 = math.log %8 : vector<1x128xf32>
    %10 = tpu.iota {dimensions = array<i32: 0>} : vector<16x128xi32>
    %11 = vector.broadcast %1 : vector<1x128xi32> to vector<16x128xi32>
    %12 = arith.cmpi eq, %10, %11 : vector<16x128xi32>
    %cst_4 = arith.constant 0.000000e+00 : f32
    %13 = vector.broadcast %cst_4 : f32 to vector<16x128xf32>
    %14 = arith.select %12, %5, %13 : vector<16x128xi1>, vector<16x128xf32>
    %cst_5 = arith.constant dense<0.000000e+00> : vector<128xf32>
    %15 = vector.multi_reduction <add>, %14, %cst_5 [0] : vector<16x128xf32> to vector<128xf32>
    %16 = vector.shape_cast %15 : vector<128xf32> to vector<1x128xf32>
    %17 = arith.subf %9, %16 : vector<1x128xf32>
    %cst_6 = arith.constant 0.000000e+00 : f32
    %18 = vector.broadcast %cst_6 : f32 to vector<1x128xf32>
    %19 = arith.subf %18, %17 : vector<1x128xf32>
    %20 = math.exp %19 : vector<1x128xf32>
    %cst_7 = arith.constant 1.000000e+00 : f32
    %21 = vector.broadcast %cst_7 : f32 to vector<1x128xf32>
    %22 = arith.subf %21, %20 : vector<1x128xf32>
    %cst_8 = arith.constant 0.000000e+00 : f32
    %23 = vector.broadcast %cst_8 : f32 to vector<1x128xf32>
    %24 = arith.maximumf %22, %23 : vector<1x128xf32>
    %25 = arith.mulf %24, %24 : vector<1x128xf32>
    %26 = arith.mulf %25, %17 : vector<1x128xf32>
    %c128_i32 = arith.constant 128 : i32
    %27 = arith.muli %arg0, %c128_i32 : i32
    %28 = tpu.iota {dimensions = array<i32: 1>} : vector<1x128xi32>
    %29 = vector.broadcast %27 : i32 to vector<1x128xi32>
    %30 = arith.addi %29, %28 : vector<1x128xi32>
    %c8_i32 = arith.constant 8 : i32
    %31 = vector.broadcast %c8_i32 : i32 to vector<1x128xi32>
    %32 = arith.cmpi slt, %30, %31 : vector<1x128xi32>
    %cst_9 = arith.constant 0.000000e+00 : f32
    %33 = vector.broadcast %cst_9 : f32 to vector<1x128xf32>
    %34 = arith.select %32, %26, %33 : vector<1x128xi1>, vector<1x128xf32>
    %35 = vector.shape_cast %34 : vector<1x128xf32> to vector<1x1x128xf32>
    %cst_10 = arith.constant dense<0.000000e+00> : vector<1xf32>
    %36 = vector.multi_reduction <add>, %35, %cst_10 [1, 2] : vector<1x1x128xf32> to vector<1xf32>
    %37 = vector.shape_cast %36 : vector<1xf32> to vector<1x1x1xf32>
    %38 = vector.extract %37[0, 0, 0] : f32 from vector<1x1x1xf32>
    %39 = vector.broadcast %38 : f32 to vector<1x8x128xf32>
    %c0_11 = arith.constant 0 : index
    %c0_12 = arith.constant 0 : index
    %c0_13 = arith.constant 0 : index
    %40 = vector.load %arg3[%c0_11, %c0_12, %c0_13] : memref<1x8x128xf32, #tpu.memory_space<vmem>>, vector<1x8x128xf32>
    tpu.vector_store %arg3[%c0_11, %c0_12, %c0_13], %39 {strides = array<i32>} : memref<1x8x128xf32, #tpu.memory_space<vmem>>, vector<1x8x128xf32>,
    return
  }
  func.func @transform_0(%arg0: i32) -> (i32, i32) {
    %c0_i32 = arith.constant 0 : i32
    %c0_i32_0 = arith.constant 0 : i32
    return %c0_i32, %arg0 : i32, i32
  }
  func.func @transform_1(%arg0: i32) -> (i32, i32) {
    %c0_i32 = arith.constant 0 : i32
    %c0_i32_0 = arith.constant 0 : i32
    return %c0_i32, %arg0 : i32, i32
  }
  func.func @transform_2(%arg0: i32) -> (i32, i32, i32) {
    %c0_i32 = arith.constant 0 : i32
    %c0_i32_0 = arith.constant 0 : i32
    %c0_i32_1 = arith.constant 0 : i32
    return %arg0, %c0_i32, %c0_i32_0 : i32, i32, i32
  }
}

</mosaic_0001>

<bundles_post_ra>
// kernel: tpu_custom_call.1
= control target key start
LH: loop header
LB: loop body
LE: loop exit
PB: predicated region body
PF: predicated region fallthrough
CT: control target
= control target key end

     0   :  { %s170_s0 = inlined_call_operand.vmem [shape: f32[16,8], index: 0, kind: input, shape index: {}]   ;;  %s171_s1 = inlined_call_operand.vmem [shape: s32[1,8], index: 1, kind: input, shape index: {}]   ;;  %s172_s2 = inlined_call_operand.hbm [shape: f32[1,8,128], index: 2, kind: output, shape index: {}]  }
   0x1   :  { %v12_v0 = vld [vmem:[%s170_s0] sm:$0xff]  ;;  %v13_v1 = vld [vmem:[%s170_s0 + $0x8] sm:$0xff] }
   0x2   :  { %v15_v2 = vmax.f32 %v12_v0, %v13_v1 }
   0x3   :  { %7 = vsyncpa [#allocation3], 0  ;;  %v37_v8 = vlaneseq  ;;  %v97_v16 = vld [vmem:[%s171_s1] ss:$0 sm:$0xff]  ;;  %vm70_vm3 = vcmask 1040384   ;;  %s133_s0 = smov [#allocation2]  }
   0x4   :  { %v16_v3 = vrot.slane %v15_v2, 4  ;;  %s89_s1 = sshll.u32 %s133_s0, 4  ;;  %s90_s1 = int_to_ptr.vmem [resolvable:$true] %s89_s1 }
   0x5   :  { %v38_v12 = vshrl.u32 %v37_v8, 7  ;;  %v65_v42 = vand.u32 127, %v37_v8  ;;  %s109_s16 = scalar_lea.vmem %s90_s1, 128  ;;  %p114_p1 = scmp.lt.s32.totalorder %s90_s1, %s90_s1 }
   0x6   :  { %v17_v4 = vmax.f32 %v15_v2, %v16_v3  ;;  %p110_p0 = scmp.ne.s32.totalorder %s90_s1, %s109_s16  ;;  %p115_p2 = scmp.lt.s32.totalorder %s109_s16, %s109_s16 }
   0x7   :  { %v39_v15 = vadd.s32 8, %v38_v12  ;;  %vm44_vm0 = vcmp.eq.s32.totalorder %v38_v12, %v97_v16  ;;  %vm68_vm2 = vcmp.lt.s32.totalorder %v65_v42, 8 }
   0x8   :  { %v18_v5 = vrot.slane %v17_v4, 2  ;;  %p116_p3 = por %p115_p2, %p114_p1 }
   0x9   :  { %vm45_vm1 = vcmp.eq.s32.totalorder %v39_v15, %v97_v16 }
   0xa   :  { %v19_v6 = vmax.f32 %v17_v4, %v18_v5  ;;  %p117_p4 = pnand %p116_p3, %p110_p0 }
   0xc   :  { %v20_v7 = vrot.slane %v19_v6, 1 }
   0xe   :  { %v21_v9 = vmax.f32 %v19_v6, %v20_v7 }
  0x10   :  { %v22_v10 = vsub.f32 %v12_v0, %v21_v9  ;;  %v23_v11 = vsub.f32 %v13_v1, %v21_v9 }
  0x12   :  { %v24_v13 = vmul.f32 1.442695, %v22_v10  ;;  %v26_v14 = vmul.f32 1.442695, %v23_v11  ;;  %v46_v17 = vsel %vm44_vm0, %v22_v10, 0.0  ;;  %v47_v18 = vsel %vm45_vm1, %v23_v11, 0.0 }
  0x13   :  { %v48_v21 = vadd.f32 %v47_v18, %v46_v17 }
  0x14   :  { %101 = vpow2.f32 %v24_v13 }
  0x15   :  { %103 = vpow2.f32 %v26_v14  ;;  %v49_v24 = vrot.slane %v48_v21, 4 }
  0x17   :  { %v50_v27 = vadd.f32 %v49_v24, %v48_v21 }
  0x19   :  { %v51_v30 = vrot.slane %v50_v27, 2 }
  0x1b   :  { %v52_v32 = vadd.f32 %v51_v30, %v50_v27 }
  0x1d   :  { %v53_v33 = vrot.slane %v52_v32, 1 }
  0x1e   :  { %v102_v19 = vpop.eup %101 }
  0x1f   :  { %v104_v20 = vpop.eup %103  ;;  %v54_v34 = vadd.f32 %v53_v33, %v52_v32 }
  0x20   :  { %v28_v22 = vadd.f32 %v104_v20, %v102_v19 }
  0x22   :  { %v29_v23 = vrot.slane %v28_v22, 4 }
  0x24   :  { %v30_v25 = vadd.f32 %v29_v23, %v28_v22 }
  0x26   :  { %v31_v26 = vrot.slane %v30_v25, 2 }
  0x28   :  { %v32_v28 = vadd.f32 %v31_v26, %v30_v25 }
  0x2a   :  { %v33_v29 = vrot.slane %v32_v28, 1 }
  0x2c   :  { %v34_v31 = vadd.f32 %v33_v29, %v32_v28 }
  0x2e   :  { %105 = vlog2.f32 %v34_v31 }
  0x38   :  { %v106_v35 = vpop.eup %105 }
  0x39   :  { %v36_v36 = vmul.f32 0.6931472, %v106_v35 }
  0x3b   :  { %v55_v37 = vsub.f32 %v36_v36, %v54_v34 }
  0x3d   :  { %v56_v38 = vsub.f32 0.0, %v55_v37 }
  0x3f   :  { %v57_v39 = vmul.f32 1.442695, %v56_v38 }
  0x41   :  { %107 = vpow2.f32 %v57_v39 }
  0x4b   :  { %v108_v40 = vpop.eup %107 }
  0x4c   :  { %v59_v41 = vsub.f32 1.0, %v108_v40 }
  0x4e   :  { %v60_v43 = vmax.f32 %v59_v41, 0.0 }
  0x50   :  { %v61_v44 = vmul.f32 %v60_v43, %v60_v43 }
  0x52   :  { %v62_v45 = vmul.f32 %v61_v44, %v55_v37 }
  0x54   :  { %v69_v46 = vsel %vm68_vm2, %v62_v45, 0.0 }
  0x55   :  { %v71_v47 = vsel %vm70_vm3, %v69_v46, 0.0 }
  0x56   :  { %72 = vadd.xlane.f32.xlu0 %v71_v47 }
  0xe3   :  { %v73_v48 = vpop.xlane.xlu0 %72 }
  0xe4   :  { %v74_v49 = vrot.slane %v73_v48, 4 }
  0xe6   :  { %v75_v50 = vadd.f32 %v74_v49, %v73_v48 }
  0xe8   :  { %v76_v51 = vrot.slane %v75_v50, 2 }
  0xea   :  { %v77_v52 = vadd.f32 %v76_v51, %v75_v50 }
  0xec   :  { %v78_v53 = vrot.slane %v77_v52, 1 }
  0xee   :  { %v79_v54 = vadd.f32 %v78_v53, %v77_v52 }
  0xf0   :  { %98 = vpush %v79_v54 }
 0x121   :  { %s99_s15 = spop %98 }
 0x122   :  { %v81_v55 = vstv %s99_s15 }
 0x123   :  { %82 = vst [vmem:[#allocation2] sm:$0xff] %v81_v55 }
 0x124   :  { %120 = shalt.err (!%p117_p4)
}
 0x125   :  { %s121_s19 = scalar_lea.hbm %s172_s2, 128 }
 0x126   :  { %p122_p5 = scmp.ne.s32.totalorder %s172_s2, %s121_s19  ;;  %p125_p6 = scmp.lt.u32.totalorder %s121_s19, %s172_s2 }
 0x128   :  { %p127_p7 = pnand %p125_p6, %p122_p5 }
 0x12a   :  { %130 = shalt.err (!%p127_p7)
}
 0x12b   :  { %92 = dma.vmem_to_hbm [thread:$0]  %s90_s1, 128, %s172_s2, [#allocation3]  }
 0x12c   :  { %131 = dma.done.wait [#allocation3], 128  }
 0x12d   :  { %132 = vsyncadd [#allocation3], 4294967168 }
 0x12e   :  { %96 = vsyncpa [#allocation3], 1 }

</bundles_post_ra>
